<compile_context>
chip_gen: v5e
topology: v5e:2x2
jax: 0.10.0
libtpu: 0.0.40
codegen_flags: <defaults>
</compile_context>

<pallas_src>
from functools import partial

import jax
import jax.numpy as jnp
import numpy as np
from jax import lax
from jax.experimental import pallas as pl
from jax.experimental.pallas import tpu as pltpu

LN_EPS = 1e-5


# ----------------------------------------------------------------------------
# Kernel
# ----------------------------------------------------------------------------
def _make_kernel(fuse_gate):
    """Builds the kernel; fuse_gate=True uses one [tT,2H]@[2H,H] gate matmul."""

    def kernel(trg_ref, scale_ref, egg_ref, tril_ref, wk_ref, wg_ref,
               b_ref, lnw_ref, lnb_ref, out_ref, csum_ref, gin_ref):
        ti = pl.program_id(1)
        n_t = pl.num_programs(1)
        H = out_ref.shape[-1]

        trg = trg_ref[0]                  # [tT, H] f32
        scale = scale_ref[0]              # [tT, 1] f32 = mask / cumsum(mask)
        egg = egg_ref[0]                  # [2, H]  f32
        eg = egg[0:1]                     # [1, H]  enc_global_layer(pooled enc)
        gg = egg[1:2]                     # [1, H]  enc_gate_global(eg)

        def linear(x, wi, bi):
            # Weights pre-transposed to [in,out] bf16 (MXU-native), f32 accum.
            y = jnp.dot(x.astype(jnp.bfloat16), wk_ref[wi],
                        preferred_element_type=jnp.float32)
            return y + b_ref[bi]

        def layer_norm(x, i):
            mu = jnp.mean(x, axis=-1, keepdims=True)
            xc = x - mu
            var = jnp.mean(xc * xc, axis=-1, keepdims=True)
            return xc * lax.rsqrt(var + LN_EPS) * lnw_ref[i] + lnb_ref[i]

        # ---- running prefix sum along time (f32 carry across T tiles) ----
        @pl.when(ti == 0)
        def _():
            csum_ref[...] = jnp.zeros_like(csum_ref)

        cum_trg = (jnp.dot(tril_ref[...], trg.astype(jnp.bfloat16),
                           preferred_element_type=jnp.float32)
                   + csum_ref[...])

        @pl.when(ti + 1 < n_t)
        def _():
            csum_ref[...] += jnp.sum(trg, axis=0, keepdims=True)

        # ---- decoder (self) branch ----
        _trg = linear(trg, 0, 0)                          # dec_siamese(trg)
        # scale already encodes mask/cumcount (0/0 -> NaN kept, faithful to ref)
        dec_global = linear(cum_trg * scale, 1, 1)        # dec_global_layer

        if fuse_gate:
            # one MXU pass: concat([_trg, dec_global]) @ [W2.T ; W3.T]
            gin_ref[:, :H] = _trg.astype(jnp.bfloat16)
            gin_ref[:, H:] = dec_global.astype(jnp.bfloat16)
            gate_pre = jnp.dot(gin_ref[...], wg_ref[...],
                               preferred_element_type=jnp.float32)
        else:
            gate_pre = (jnp.dot(_trg.astype(jnp.bfloat16), wg_ref[:H],
                                preferred_element_type=jnp.float32)
                        + jnp.dot(dec_global.astype(jnp.bfloat16), wg_ref[H:],
                                  preferred_element_type=jnp.float32))
        dec_gate = jax.nn.sigmoid(gate_pre + b_ref[2])    # bias = b2 + b3 fused

        t = dec_global + dec_gate * (_trg - dec_global)   # FMA-form blend
        t = layer_norm(t + jnp.maximum(t, 0.0), 0)        # dropout == identity

        # ---- encoder (cross) branch (pooled vectors precomputed in wrapper) ----
        enc_gate = jax.nn.sigmoid(linear(t, 2, 3) + gg)   # enc_gate_siamese(t)+gg
        t2 = eg + enc_gate * (_trg - eg)                  # FMA-form blend
        t2 = layer_norm(t2 + jnp.maximum(t2, 0.0), 1)

        out_ref[0] = t2.astype(out_ref.dtype)

    return kernel


# ----------------------------------------------------------------------------
# Tiling / VMEM helpers
# ----------------------------------------------------------------------------
def _round_up(x, m):
    return -(-x // m) * m


def _vmem_budget_bytes(frac=0.8):
    """Generation-aware VMEM cap: ~51 MiB on v7x (64 MiB phys), ~102 MiB on
    v5e/v6e (128 MiB phys). Falls back to the conservative v7x figure."""
    try:
        cap = int(pltpu.get_tpu_info().vmem_capacity_bytes)
    except Exception:
        cap = 64 * 2 ** 20
    return int(cap * frac)


def _estimate_vmem_bytes(t_tile, H, out_bytes):
    f32, bf16 = 4, 2
    io = 2 * (t_tile * H * f32 + t_tile * 128 * f32 + 2 * H * f32)  # dbl-buf inputs
    io += 2 * t_tile * H * out_bytes                                # dbl-buf output
    params = t_tile * t_tile * bf16 + 5 * H * H * bf16 + 8 * H * f32
    scratch = H * f32 + t_tile * 2 * H * bf16
    temps = 14 * t_tile * H * f32                                   # live f32 temps
    return io + params + scratch + temps


def _pick_t_tile(T, H, budget_bytes, out_bytes):
    """Largest time tile (multiple of 8, <=512) that fits the VMEM budget.
    T is padded up to a multiple of the tile by the caller (never T x T tril)."""
    cands = [512, 256, 128, 64, 32, 16, 8]
    t8 = _round_up(T, 8)
    if t8 <= 512:
        cands = [t8] + [c for c in cands if c < t8]
    for c in cands:
        if _estimate_vmem_bytes(c, H, out_bytes) <= budget_bytes:
            return c
    return 8


# ----------------------------------------------------------------------------
# Parameter prep (done once at weight-load time, NOT per forward call)
# ----------------------------------------------------------------------------
def init_params(key, hid_dim):
    """PyTorch-layout params, uniform(-1/sqrt(H), 1/sqrt(H)).
    0:dec_siamese 1:dec_global_layer 2:dec_gate_siamese 3:enc_gate_global
    4:enc_global_layer 5:enc_gate_siamese (only layers used by forward)."""
    bound = 1.0 / np.sqrt(hid_dim)
    kw, kb = jax.random.split(key)
    W = jax.random.uniform(kw, (6, hid_dim, hid_dim), jnp.float32, -bound, bound)
    b = jax.random.uniform(kb, (6, 1, hid_dim), jnp.float32, -bound, bound)
    lnw = jnp.ones((2, 1, hid_dim), jnp.float32)
    lnb = jnp.zeros((2, 1, hid_dim), jnp.float32)
    return W, b, lnw, lnb


def prepare_params(params):
    """Kernel-side weight prep: transpose to [in,out], cast to bf16, fuse the
    two gate weights along K. Run once when weights are loaded."""
    W, b, lnw, lnb = params
    Wk = jnp.stack([W[0].T, W[1].T, W[5].T]).astype(jnp.bfloat16)        # [3,H,H]
    Wg = jnp.concatenate([W[2].T, W[3].T], axis=0).astype(jnp.bfloat16)  # [2H,H]
    bk = jnp.stack([b[0], b[1], b[2] + b[3], b[5]]).astype(jnp.float32)  # [4,1,H]
    return {
        "Wk": Wk, "Wg": Wg, "bk": bk,
        "lnw": lnw.astype(jnp.float32), "lnb": lnb.astype(jnp.float32),
        "We_global": W[4].T.astype(jnp.float32), "be_global": b[4, 0],
        "We_gate": W[3].T.astype(jnp.float32), "be_gate": b[3, 0],
    }


# ----------------------------------------------------------------------------
# Forward wrapper
# ----------------------------------------------------------------------------
@partial(jax.jit, static_argnames=("out_dtype", "t_tile"))
def gated_dss_decoder_layer(trg, enc_src, trg_mask, src_mask, kparams,
                            out_dtype=jnp.float32, t_tile=None):
    """trg: [B,T,H], enc_src: [B,S,H], trg_mask: [B,1,1,T], src_mask: [B,1,1,S].
    Set out_dtype=jnp.bfloat16 to halve output HBM writeback if downstream
    accepts bf16."""
    B, T, H = trg.shape
    S = enc_src.shape[1]

    trg = trg.astype(jnp.float32)
    tmask = trg_mask.reshape(B, T, 1).astype(jnp.float32)
    smask = src_mask.reshape(B, S, 1).astype(jnp.float32)

    # Hoisted: scale = mask / cumsum(mask) (removes the N=1 count matmul and
    # the divide from the kernel; 0/0 NaN for a fully padded prefix preserved).
    scale = tmask / jnp.cumsum(tmask, axis=1)

    # Encoder pooled-vector path batched as [B,H]@[H,H] in XLA; the kernel
    # never touches enc_src / src_mask.
    enc_pool = (jnp.sum(enc_src.astype(jnp.float32) * smask, axis=1)
                / jnp.sum(smask, axis=1))                            # [B,H]
    eg = enc_pool @ kparams["We_global"] + kparams["be_global"]      # enc_global_layer
    gg = eg @ kparams["We_gate"] + kparams["be_gate"]                # enc_gate_global(eg)
    egg = jnp.stack([eg, gg], axis=1)                                # [B,2,H] single input

    budget = _vmem_budget_bytes()
    out_bytes = jnp.dtype(out_dtype).itemsize
    if t_tile is None:
        t_tile = _pick_t_tile(T, H, budget, out_bytes)
    else:
        t_tile = _round_up(int(t_tile), 8)

    T_pad = _round_up(T, t_tile)
    if T_pad != T:
        pad = ((0, 0), (0, T_pad - T), (0, 0))
        trg = jnp.pad(trg, pad)
        scale = jnp.pad(scale, pad)
    n_t = T_pad // t_tile

    # Tile-sized lower-triangular prefix-sum matrix, built once.
    tril = (jnp.arange(t_tile)[:, None] >= jnp.arange(t_tile)[None, :]
            ).astype(jnp.bfloat16)

    grid_spec = pltpu.PrefetchScalarGridSpec(
        num_scalar_prefetch=0,
        grid=(B, n_t),
        in_specs=[
            pl.BlockSpec((1, t_tile, H), lambda bi, ti: (bi, ti, 0)),   # trg (f32)
            pl.BlockSpec((1, t_tile, 1), lambda bi, ti: (bi, ti, 0)),   # mask scale
            pl.BlockSpec((1, 2, H), lambda bi, ti: (bi, 0, 0)),         # [eg; gg]
            # Grid-invariant params: whole-array VMEM residents (single copy,
            # no per-step double-buffering).
            pl.BlockSpec(memory_space=pltpu.MemorySpace.VMEM),          # tril
            pl.BlockSpec(memory_space=pltpu.MemorySpace.VMEM),          # Wk
            pl.BlockSpec(memory_space=pltpu.MemorySpace.VMEM),          # Wg (fused gate)
            pl.BlockSpec(memory_space=pltpu.MemorySpace.VMEM),          # bk
            pl.BlockSpec(memory_space=pltpu.MemorySpace.VMEM),          # ln gamma
            pl.BlockSpec(memory_space=pltpu.MemorySpace.VMEM),          # ln beta
        ],
        out_specs=pl.BlockSpec((1, t_tile, H), lambda bi, ti: (bi, ti, 0)),
        scratch_shapes=[
            pltpu.VMEM((1, H), jnp.float32),              # running sum(trg) carry
            pltpu.VMEM((t_tile, 2 * H), jnp.bfloat16),    # fused-gate concat buffer
        ],
    )

    out = pl.pallas_call(
        _make_kernel(fuse_gate=(H % 128 == 0)),
        out_shape=jax.ShapeDtypeStruct((B, T_pad, H), out_dtype),
        grid_spec=grid_spec,
        compiler_params=pltpu.CompilerParams(
            dimension_semantics=("parallel", "arbitrary"),
            vmem_limit_bytes=budget),
    )(trg, scale, egg, tril, kparams["Wk"], kparams["Wg"],
      kparams["bk"], kparams["lnw"], kparams["lnb"])

    return out[:, :T, :] if T_pad != T else out


# ----------------------------------------------------------------------------
# Pure-JAX reference (mirrors the PyTorch forward, eval-mode dropout)
# ----------------------------------------------------------------------------
def ref_forward(params, trg, enc_src, trg_mask, src_mask):
    W, b, lnw, lnb = params
    B, T, H = trg.shape
    S = enc_src.shape[1]
    tm = trg_mask.reshape(B, T, 1).astype(jnp.float32)
    sm = src_mask.reshape(B, S, 1).astype(jnp.float32)

    def lin(x, i):
        return x @ W[i].T + b[i, 0]

    def ln(x, i):
        mu = x.mean(-1, keepdims=True)
        var = ((x - mu) ** 2).mean(-1, keepdims=True)
        return (x - mu) / jnp.sqrt(var + LN_EPS) * lnw[i, 0] + lnb[i, 0]

    _trg = lin(trg, 0)
    dg = jnp.cumsum(trg, axis=1) / jnp.cumsum(tm, axis=1) * tm
    dg = lin(dg, 1)
    gate = jax.nn.sigmoid(lin(_trg, 2) + lin(dg, 3))
    t = _trg * gate + dg * (1 - gate)
    t = ln(t + jnp.maximum(t, 0.0), 0)

    eg = jnp.sum(enc_src * sm, axis=1) / jnp.sum(sm, axis=1)
    eg = lin(eg, 4)[:, None, :]
    gate2 = jax.nn.sigmoid(lin(t, 5) + lin(eg, 3))
    t2 = _trg * gate2 + eg * (1 - gate2)
    t2 = ln(t2 + jnp.maximum(t2, 0.0), 1)
    return t2


if __name__ == "__main__":
    B, T, S, H = 2, 20, 12, 128
    key = jax.random.PRNGKey(0)
    k1, k2, k3 = jax.random.split(key, 3)

    trg = jax.random.normal(k1, (B, T, H), jnp.float32)
    enc_src = jax.random.normal(k2, (B, S, H), jnp.float32)

    # padding masks: [B,1,1,T] / [B,1,1,S], leading positions valid
    trg_lens = jnp.array([T, 13])
    src_lens = jnp.array([S, 7])
    trg_mask = (jnp.arange(T)[None, :] < trg_lens[:, None]).astype(
        jnp.float32).reshape(B, 1, 1, T)
    src_mask = (jnp.arange(S)[None, :] < src_lens[:, None]).astype(
        jnp.float32).reshape(B, 1, 1, S)

    params = init_params(k3, H)
    kparams = prepare_params(params)   # one-time weight prep (not per call)

    # t_tile=8 forces multiple time tiles + T padding so the multi-tile
    # prefix-sum carry and pad paths are exercised at this tiny test size.
    out = gated_dss_decoder_layer(trg, enc_src, trg_mask, src_mask, kparams,
                                  t_tile=8)
    out = jax.block_until_ready(out)
    assert out.shape == (B, T, H)

    ref = ref_forward(params, trg, enc_src, trg_mask, src_mask)
    # MXU operands run in bf16 (f32 accumulation, f32 prefix-sum carry) against
    # an all-f32 reference, hence the loosened tolerance.
    np.testing.assert_allclose(np.asarray(out), np.asarray(ref),
                               rtol=5e-2, atol=5e-2)
    print("KERNEL_OK")
</pallas_src>

<mosaic_0001>
module attributes {stable_mosaic.version = 11 : i64} {
  func.func @kernel(%arg0: i32, %arg1: i32, %arg2: memref<1x8x128xf32, #tpu.memory_space<vmem>>, %arg3: memref<1x8x1xf32, #tpu.memory_space<vmem>>, %arg4: memref<1x2x128xf32, #tpu.memory_space<vmem>>, %arg5: memref<8x8xbf16, #tpu.memory_space<vmem>>, %arg6: memref<3x128x128xbf16, #tpu.memory_space<vmem>>, %arg7: memref<256x128xbf16, #tpu.memory_space<vmem>>, %arg8: memref<4x1x128xf32, #tpu.memory_space<vmem>>, %arg9: memref<2x1x128xf32, #tpu.memory_space<vmem>>, %arg10: memref<2x1x128xf32, #tpu.memory_space<vmem>>, %arg11: memref<1x8x128xf32, #tpu.memory_space<vmem>>, %arg12: memref<1x128xf32, #tpu.memory_space<vmem>>, %arg13: memref<8x256xbf16, #tpu.memory_space<vmem>>) attributes {dimension_semantics = [#tpu.dimension_semantics<parallel>, #tpu.dimension_semantics<arbitrary>], iteration_bounds = array<i64: 2, 3>, scalar_prefetch = 0 : i64, scratch_operands = 2 : i64, tpu.core_type = #tpu.core_type<tc>, window_params = [{transform_indices = @transform_0, window_bounds = array<i64: 1, 8, 128>}, {transform_indices = @transform_1, window_bounds = array<i64: 1, 8, 1>}, {transform_indices = @transform_2, window_bounds = array<i64: 1, 2, 128>}, {pipeline_mode = #tpu.pipeline_mode<synchronous>, transform_indices = @transform_3, window_bounds = array<i64: 8, 8>}, {pipeline_mode = #tpu.pipeline_mode<synchronous>, transform_indices = @transform_4, window_bounds = array<i64: 3, 128, 128>}, {pipeline_mode = #tpu.pipeline_mode<synchronous>, transform_indices = @transform_5, window_bounds = array<i64: 256, 128>}, {pipeline_mode = #tpu.pipeline_mode<synchronous>, transform_indices = @transform_6, window_bounds = array<i64: 4, 1, 128>}, {pipeline_mode = #tpu.pipeline_mode<synchronous>, transform_indices = @transform_7, window_bounds = array<i64: 2, 1, 128>}, {pipeline_mode = #tpu.pipeline_mode<synchronous>, transform_indices = @transform_8, window_bounds = array<i64: 2, 1, 128>}, {transform_indices = @transform_9, window_bounds = array<i64: 1, 8, 128>}]} {
    %c0 = arith.constant 0 : index
    %c0_0 = arith.constant 0 : index
    %c0_1 = arith.constant 0 : index
    %0 = vector.load %arg2[%c0, %c0_0, %c0_1] : memref<1x8x128xf32, #tpu.memory_space<vmem>>, vector<1x8x128xf32>
    %1 = vector.shape_cast %0 : vector<1x8x128xf32> to vector<8x128xf32>
    %c0_2 = arith.constant 0 : index
    %c0_3 = arith.constant 0 : index
    %c0_4 = arith.constant 0 : index
    %2 = vector.load %arg3[%c0_2, %c0_3, %c0_4] : memref<1x8x1xf32, #tpu.memory_space<vmem>>, vector<1x8x1xf32>
    %3 = vector.shape_cast %2 : vector<1x8x1xf32> to vector<8x1xf32>
    %c0_5 = arith.constant 0 : index
    %c0_6 = arith.constant 0 : index
    %c0_7 = arith.constant 0 : index
    %4 = vector.load %arg4[%c0_5, %c0_6, %c0_7] : memref<1x2x128xf32, #tpu.memory_space<vmem>>, vector<1x2x128xf32>
    %5 = vector.shape_cast %4 : vector<1x2x128xf32> to vector<2x128xf32>
    %6 = vector.extract_strided_slice %5 {offsets = [0, 0], sizes = [1, 128], strides = [1, 1]} : vector<2x128xf32> to vector<1x128xf32>
    %7 = vector.extract_strided_slice %5 {offsets = [1, 0], sizes = [1, 128], strides = [1, 1]} : vector<2x128xf32> to vector<1x128xf32>
    %c0_i32 = arith.constant 0 : i32
    %8 = arith.cmpi eq, %arg1, %c0_i32 : i32
    %9 = arith.extui %8 : i1 to i32
    %c0_i32_8 = arith.constant 0 : i32
    %10 = arith.cmpi ne, %9, %c0_i32_8 : i32
    scf.if %10 {
      %cst_72 = arith.constant 0.000000e+00 : f32
      %135 = vector.broadcast %cst_72 : f32 to vector<1x128xf32>
      %c0_73 = arith.constant 0 : index
      %c0_74 = arith.constant 0 : index
      %136 = vector.load %arg12[%c0_73, %c0_74] : memref<1x128xf32, #tpu.memory_space<vmem>>, vector<1x128xf32>
      tpu.vector_store %arg12[%c0_73, %c0_74], %135 {strides = array<i32>} : memref<1x128xf32, #tpu.memory_space<vmem>>, vector<1x128xf32>,
    } else {
    }
    %c0_9 = arith.constant 0 : index
    %c0_10 = arith.constant 0 : index
    %11 = vector.load %arg5[%c0_9, %c0_10] : memref<8x8xbf16, #tpu.memory_space<vmem>>, vector<8x8xbf16>
    %12 = arith.truncf %1 : vector<8x128xf32> to vector<8x128xbf16>
    %cst = arith.constant dense<0.000000e+00> : vector<8x128xf32>
    %13 = tpu.matmul %11, %12, %cst {dimension_numbers = #tpu.dot_dimension_numbers<[1], [0], [0], [1], [0, 0, 1, 1], [], []>} : vector<8x8xbf16>, vector<8x128xbf16>, vector<8x128xf32> -> vector<8x128xf32>
    %c0_11 = arith.constant 0 : index
    %c0_12 = arith.constant 0 : index
    %14 = vector.load %arg12[%c0_11, %c0_12] : memref<1x128xf32, #tpu.memory_space<vmem>>, vector<1x128xf32>
    %15 = vector.broadcast %14 : vector<1x128xf32> to vector<8x128xf32>
    %16 = arith.addf %13, %15 : vector<8x128xf32>
    %c1_i32 = arith.constant 1 : i32
    %17 = arith.addi %arg1, %c1_i32 : i32
    %c3_i32 = arith.constant 3 : i32
    %18 = arith.cmpi slt, %17, %c3_i32 : i32
    %19 = arith.extui %18 : i1 to i32
    %c0_i32_13 = arith.constant 0 : i32
    %20 = arith.cmpi ne, %19, %c0_i32_13 : i32
    scf.if %20 {
      %c0_72 = arith.constant 0 : index
      %c0_73 = arith.constant 0 : index
      %135 = vector.load %arg12[%c0_72, %c0_73] : memref<1x128xf32, #tpu.memory_space<vmem>>, vector<1x128xf32>
      %cst_74 = arith.constant dense<0.000000e+00> : vector<128xf32>
      %136 = vector.multi_reduction <add>, %1, %cst_74 [0] : vector<8x128xf32> to vector<128xf32>
      %137 = vector.shape_cast %136 : vector<128xf32> to vector<1x128xf32>
      %138 = arith.addf %135, %137 : vector<1x128xf32>
      %c0_75 = arith.constant 0 : index
      %c0_76 = arith.constant 0 : index
      %139 = vector.load %arg12[%c0_75, %c0_76] : memref<1x128xf32, #tpu.memory_space<vmem>>, vector<1x128xf32>
      tpu.vector_store %arg12[%c0_75, %c0_76], %138 {strides = array<i32>} : memref<1x128xf32, #tpu.memory_space<vmem>>, vector<1x128xf32>,
    } else {
    }
    %21 = arith.truncf %1 : vector<8x128xf32> to vector<8x128xbf16>
    %c0_14 = arith.constant 0 : index
    %c0_15 = arith.constant 0 : index
    %c0_16 = arith.constant 0 : index
    %22 = vector.load %arg6[%c0_14, %c0_15, %c0_16] : memref<3x128x128xbf16, #tpu.memory_space<vmem>>, vector<1x128x128xbf16>
    %23 = vector.shape_cast %22 : vector<1x128x128xbf16> to vector<128x128xbf16>
    %cst_17 = arith.constant dense<0.000000e+00> : vector<8x128xf32>
    %24 = tpu.matmul %21, %23, %cst_17 {dimension_numbers = #tpu.dot_dimension_numbers<[1], [0], [0], [1], [0, 0, 1, 1], [], []>} : vector<8x128xbf16>, vector<128x128xbf16>, vector<8x128xf32> -> vector<8x128xf32>
    %c0_18 = arith.constant 0 : index
    %c0_19 = arith.constant 0 : index
    %c0_20 = arith.constant 0 : index
    %25 = vector.load %arg8[%c0_18, %c0_19, %c0_20] : memref<4x1x128xf32, #tpu.memory_space<vmem>>, vector<1x1x128xf32>
    %26 = vector.shape_cast %25 : vector<1x1x128xf32> to vector<1x128xf32>
    %27 = vector.broadcast %26 : vector<1x128xf32> to vector<8x128xf32>
    %28 = arith.addf %24, %27 : vector<8x128xf32>
    %29 = vector.broadcast %3 : vector<8x1xf32> to vector<8x128xf32>
    %30 = arith.mulf %16, %29 : vector<8x128xf32>
    %31 = arith.truncf %30 : vector<8x128xf32> to vector<8x128xbf16>
    %c1 = arith.constant 1 : index
    %c0_21 = arith.constant 0 : index
    %c0_22 = arith.constant 0 : index
    %32 = vector.load %arg6[%c1, %c0_21, %c0_22] : memref<3x128x128xbf16, #tpu.memory_space<vmem>>, vector<1x128x128xbf16>
    %33 = vector.shape_cast %32 : vector<1x128x128xbf16> to vector<128x128xbf16>
    %cst_23 = arith.constant dense<0.000000e+00> : vector<8x128xf32>
    %34 = tpu.matmul %31, %33, %cst_23 {dimension_numbers = #tpu.dot_dimension_numbers<[1], [0], [0], [1], [0, 0, 1, 1], [], []>} : vector<8x128xbf16>, vector<128x128xbf16>, vector<8x128xf32> -> vector<8x128xf32>
    %c1_24 = arith.constant 1 : index
    %c0_25 = arith.constant 0 : index
    %c0_26 = arith.constant 0 : index
    %35 = vector.load %arg8[%c1_24, %c0_25, %c0_26] : memref<4x1x128xf32, #tpu.memory_space<vmem>>, vector<1x1x128xf32>
    %36 = vector.shape_cast %35 : vector<1x1x128xf32> to vector<1x128xf32>
    %37 = vector.broadcast %36 : vector<1x128xf32> to vector<8x128xf32>
    %38 = arith.addf %34, %37 : vector<8x128xf32>
    %39 = arith.truncf %28 : vector<8x128xf32> to vector<8x128xbf16>
    %c0_27 = arith.constant 0 : index
    %c0_28 = arith.constant 0 : index
    %40 = vector.load %arg13[%c0_27, %c0_28] : memref<8x256xbf16, #tpu.memory_space<vmem>>, vector<8x128xbf16>
    tpu.vector_store %arg13[%c0_27, %c0_28], %39 {strides = array<i32>} : memref<8x256xbf16, #tpu.memory_space<vmem>>, vector<8x128xbf16>,
    %41 = arith.truncf %38 : vector<8x128xf32> to vector<8x128xbf16>
    %c0_29 = arith.constant 0 : index
    %c128 = arith.constant 128 : index
    %42 = vector.load %arg13[%c0_29, %c128] : memref<8x256xbf16, #tpu.memory_space<vmem>>, vector<8x128xbf16>
    tpu.vector_store %arg13[%c0_29, %c128], %41 {strides = array<i32>} : memref<8x256xbf16, #tpu.memory_space<vmem>>, vector<8x128xbf16>,
    %c0_30 = arith.constant 0 : index
    %c0_31 = arith.constant 0 : index
    %43 = vector.load %arg13[%c0_30, %c0_31] : memref<8x256xbf16, #tpu.memory_space<vmem>>, vector<8x256xbf16>
    %c0_32 = arith.constant 0 : index
    %c0_33 = arith.constant 0 : index
    %44 = vector.load %arg7[%c0_32, %c0_33] : memref<256x128xbf16, #tpu.memory_space<vmem>>, vector<256x128xbf16>
    %cst_34 = arith.constant dense<0.000000e+00> : vector<8x128xf32>
    %45 = tpu.matmul %43, %44, %cst_34 {dimension_numbers = #tpu.dot_dimension_numbers<[1], [0], [0], [1], [0, 0, 1, 1], [], []>} : vector<8x256xbf16>, vector<256x128xbf16>, vector<8x128xf32> -> vector<8x128xf32>
    %c2 = arith.constant 2 : index
    %c0_35 = arith.constant 0 : index
    %c0_36 = arith.constant 0 : index
    %46 = vector.load %arg8[%c2, %c0_35, %c0_36] : memref<4x1x128xf32, #tpu.memory_space<vmem>>, vector<1x1x128xf32>
    %47 = vector.shape_cast %46 : vector<1x1x128xf32> to vector<1x128xf32>
    %48 = vector.broadcast %47 : vector<1x128xf32> to vector<8x128xf32>
    %49 = arith.addf %45, %48 : vector<8x128xf32>
    %50 = arith.negf %49 : vector<8x128xf32>
    %51 = math.exp %50 : vector<8x128xf32>
    %cst_37 = arith.constant 1.000000e+00 : f32
    %52 = vector.broadcast %cst_37 : f32 to vector<8x128xf32>
    %53 = arith.addf %52, %51 : vector<8x128xf32>
    %54 = arith.divf %52, %53 : vector<8x128xf32>
    %55 = arith.subf %28, %38 : vector<8x128xf32>
    %56 = arith.mulf %54, %55 : vector<8x128xf32>
    %57 = arith.addf %38, %56 : vector<8x128xf32>
    %cst_38 = arith.constant 0.000000e+00 : f32
    %58 = vector.broadcast %cst_38 : f32 to vector<8x128xf32>
    %59 = arith.maximumf %57, %58 : vector<8x128xf32>
    %60 = arith.addf %57, %59 : vector<8x128xf32>
    %cst_39 = arith.constant dense<0.000000e+00> : vector<8xf32>
    %61 = vector.multi_reduction <add>, %60, %cst_39 [1] : vector<8x128xf32> to vector<8xf32>
    %62 = vector.shape_cast %61 : vector<8xf32> to vector<8x1xf32>
    %cst_40 = arith.constant 1.280000e+02 : f32
    %63 = vector.broadcast %cst_40 : f32 to vector<8x1xf32>
    %64 = arith.divf %62, %63 : vector<8x1xf32>
    %65 = vector.broadcast %64 : vector<8x1xf32> to vector<8x128xf32>
    %66 = arith.subf %60, %65 : vector<8x128xf32>
    %67 = arith.mulf %66, %66 : vector<8x128xf32>
    %cst_41 = arith.constant dense<0.000000e+00> : vector<8xf32>
    %68 = vector.multi_reduction <add>, %67, %cst_41 [1] : vector<8x128xf32> to vector<8xf32>
    %69 = vector.shape_cast %68 : vector<8xf32> to vector<8x1xf32>
    %cst_42 = arith.constant 1.280000e+02 : f32
    %70 = vector.broadcast %cst_42 : f32 to vector<8x1xf32>
    %71 = arith.divf %69, %70 : vector<8x1xf32>
    %cst_43 = arith.constant 9.99999974E-6 : f32
    %72 = vector.broadcast %cst_43 : f32 to vector<8x1xf32>
    %73 = arith.addf %71, %72 : vector<8x1xf32>
    %74 = math.rsqrt %73 : vector<8x1xf32>
    %75 = vector.broadcast %74 : vector<8x1xf32> to vector<8x128xf32>
    %76 = arith.mulf %66, %75 : vector<8x128xf32>
    %c0_44 = arith.constant 0 : index
    %c0_45 = arith.constant 0 : index
    %c0_46 = arith.constant 0 : index
    %77 = vector.load %arg9[%c0_44, %c0_45, %c0_46] : memref<2x1x128xf32, #tpu.memory_space<vmem>>, vector<1x1x128xf32>
    %78 = vector.shape_cast %77 : vector<1x1x128xf32> to vector<1x128xf32>
    %79 = vector.broadcast %78 : vector<1x128xf32> to vector<8x128xf32>
    %80 = arith.mulf %76, %79 : vector<8x128xf32>
    %c0_47 = arith.constant 0 : index
    %c0_48 = arith.constant 0 : index
    %c0_49 = arith.constant 0 : index
    %81 = vector.load %arg10[%c0_47, %c0_48, %c0_49] : memref<2x1x128xf32, #tpu.memory_space<vmem>>, vector<1x1x128xf32>
    %82 = vector.shape_cast %81 : vector<1x1x128xf32> to vector<1x128xf32>
    %83 = vector.broadcast %82 : vector<1x128xf32> to vector<8x128xf32>
    %84 = arith.addf %80, %83 : vector<8x128xf32>
    %85 = arith.truncf %84 : vector<8x128xf32> to vector<8x128xbf16>
    %c2_50 = arith.constant 2 : index
    %c0_51 = arith.constant 0 : index
    %c0_52 = arith.constant 0 : index
    %86 = vector.load %arg6[%c2_50, %c0_51, %c0_52] : memref<3x128x128xbf16, #tpu.memory_space<vmem>>, vector<1x128x128xbf16>
    %87 = vector.shape_cast %86 : vector<1x128x128xbf16> to vector<128x128xbf16>
    %cst_53 = arith.constant dense<0.000000e+00> : vector<8x128xf32>
    %88 = tpu.matmul %85, %87, %cst_53 {dimension_numbers = #tpu.dot_dimension_numbers<[1], [0], [0], [1], [0, 0, 1, 1], [], []>} : vector<8x128xbf16>, vector<128x128xbf16>, vector<8x128xf32> -> vector<8x128xf32>
    %c3 = arith.constant 3 : index
    %c0_54 = arith.constant 0 : index
    %c0_55 = arith.constant 0 : index
    %89 = vector.load %arg8[%c3, %c0_54, %c0_55] : memref<4x1x128xf32, #tpu.memory_space<vmem>>, vector<1x1x128xf32>
    %90 = vector.shape_cast %89 : vector<1x1x128xf32> to vector<1x128xf32>
    %91 = vector.broadcast %90 : vector<1x128xf32> to vector<8x128xf32>
    %92 = arith.addf %88, %91 : vector<8x128xf32>
    %93 = vector.broadcast %7 : vector<1x128xf32> to vector<8x128xf32>
    %94 = arith.addf %92, %93 : vector<8x128xf32>
    %95 = arith.negf %94 : vector<8x128xf32>
    %96 = math.exp %95 : vector<8x128xf32>
    %cst_56 = arith.constant 1.000000e+00 : f32
    %97 = vector.broadcast %cst_56 : f32 to vector<8x128xf32>
    %98 = arith.addf %97, %96 : vector<8x128xf32>
    %99 = arith.divf %97, %98 : vector<8x128xf32>
    %100 = vector.broadcast %6 : vector<1x128xf32> to vector<8x128xf32>
    %101 = arith.subf %28, %100 : vector<8x128xf32>
    %102 = arith.mulf %99, %101 : vector<8x128xf32>
    %103 = vector.broadcast %6 : vector<1x128xf32> to vector<8x128xf32>
    %104 = arith.addf %103, %102 : vector<8x128xf32>
    %cst_57 = arith.constant 0.000000e+00 : f32
    %105 = vector.broadcast %cst_57 : f32 to vector<8x128xf32>
    %106 = arith.maximumf %104, %105 : vector<8x128xf32>
    %107 = arith.addf %104, %106 : vector<8x128xf32>
    %cst_58 = arith.constant dense<0.000000e+00> : vector<8xf32>
    %108 = vector.multi_reduction <add>, %107, %cst_58 [1] : vector<8x128xf32> to vector<8xf32>
    %109 = vector.shape_cast %108 : vector<8xf32> to vector<8x1xf32>
    %cst_59 = arith.constant 1.280000e+02 : f32
    %110 = vector.broadcast %cst_59 : f32 to vector<8x1xf32>
    %111 = arith.divf %109, %110 : vector<8x1xf32>
    %112 = vector.broadcast %111 : vector<8x1xf32> to vector<8x128xf32>
    %113 = arith.subf %107, %112 : vector<8x128xf32>
    %114 = arith.mulf %113, %113 : vector<8x128xf32>
    %cst_60 = arith.constant dense<0.000000e+00> : vector<8xf32>
    %115 = vector.multi_reduction <add>, %114, %cst_60 [1] : vector<8x128xf32> to vector<8xf32>
    %116 = vector.shape_cast %115 : vector<8xf32> to vector<8x1xf32>
    %cst_61 = arith.constant 1.280000e+02 : f32
    %117 = vector.broadcast %cst_61 : f32 to vector<8x1xf32>
    %118 = arith.divf %116, %117 : vector<8x1xf32>
    %cst_62 = arith.constant 9.99999974E-6 : f32
    %119 = vector.broadcast %cst_62 : f32 to vector<8x1xf32>
    %120 = arith.addf %118, %119 : vector<8x1xf32>
    %121 = math.rsqrt %120 : vector<8x1xf32>
    %122 = vector.broadcast %121 : vector<8x1xf32> to vector<8x128xf32>
    %123 = arith.mulf %113, %122 : vector<8x128xf32>
    %c1_63 = arith.constant 1 : index
    %c0_64 = arith.constant 0 : index
    %c0_65 = arith.constant 0 : index
    %124 = vector.load %arg9[%c1_63, %c0_64, %c0_65] : memref<2x1x128xf32, #tpu.memory_space<vmem>>, vector<1x1x128xf32>
    %125 = vector.shape_cast %124 : vector<1x1x128xf32> to vector<1x128xf32>
    %126 = vector.broadcast %125 : vector<1x128xf32> to vector<8x128xf32>
    %127 = arith.mulf %123, %126 : vector<8x128xf32>
    %c1_66 = arith.constant 1 : index
    %c0_67 = arith.constant 0 : index
    %c0_68 = arith.constant 0 : index
    %128 = vector.load %arg10[%c1_66, %c0_67, %c0_68] : memref<2x1x128xf32, #tpu.memory_space<vmem>>, vector<1x1x128xf32>
    %129 = vector.shape_cast %128 : vector<1x1x128xf32> to vector<1x128xf32>
    %130 = vector.broadcast %129 : vector<1x128xf32> to vector<8x128xf32>
    %131 = arith.addf %127, %130 : vector<8x128xf32>
    %c0_69 = arith.constant 0 : index
    %c0_70 = arith.constant 0 : index
    %c0_71 = arith.constant 0 : index
    %132 = vector.load %arg11[%c0_69, %c0_70, %c0_71] : memref<1x8x128xf32, #tpu.memory_space<vmem>>, vector<1x8x128xf32>
    %133 = vector.shape_cast %132 : vector<1x8x128xf32> to vector<8x128xf32>
    %134 = vector.shape_cast %131 : vector<8x128xf32> to vector<1x8x128xf32>
    tpu.vector_store %arg11[%c0_69, %c0_70, %c0_71], %134 {strides = array<i32>} : memref<1x8x128xf32, #tpu.memory_space<vmem>>, vector<1x8x128xf32>,
    return
  }
  func.func @transform_0(%arg0: i32, %arg1: i32) -> (i32, i32, i32) {
    %c0_i32 = arith.constant 0 : i32
    %c0_i32_0 = arith.constant 0 : i32
    return %arg0, %arg1, %c0_i32 : i32, i32, i32
  }
  func.func @transform_1(%arg0: i32, %arg1: i32) -> (i32, i32, i32) {
    %c0_i32 = arith.constant 0 : i32
    %c0_i32_0 = arith.constant 0 : i32
    return %arg0, %arg1, %c0_i32 : i32, i32, i32
  }
  func.func @transform_2(%arg0: i32, %arg1: i32) -> (i32, i32, i32) {
    %c0_i32 = arith.constant 0 : i32
    %c0_i32_0 = arith.constant 0 : i32
    %c0_i32_1 = arith.constant 0 : i32
    return %arg0, %c0_i32, %c0_i32_0 : i32, i32, i32
  }
  func.func @transform_3(%arg0: i32, %arg1: i32) -> (i32, i32) {
    %c0_i32 = arith.constant 0 : i32
    %c0_i32_0 = arith.constant 0 : i32
    %c0_i32_1 = arith.constant 0 : i32
    return %c0_i32, %c0_i32_0 : i32, i32
  }
  func.func @transform_4(%arg0: i32, %arg1: i32) -> (i32, i32, i32) {
    %c0_i32 = arith.constant 0 : i32
    %c0_i32_0 = arith.constant 0 : i32
    %c0_i32_1 = arith.constant 0 : i32
    %c0_i32_2 = arith.constant 0 : i32
    return %c0_i32, %c0_i32_0, %c0_i32_1 : i32, i32, i32
  }
  func.func @transform_5(%arg0: i32, %arg1: i32) -> (i32, i32) {
    %c0_i32 = arith.constant 0 : i32
    %c0_i32_0 = arith.constant 0 : i32
    %c0_i32_1 = arith.constant 0 : i32
    return %c0_i32, %c0_i32_0 : i32, i32
  }
  func.func @transform_6(%arg0: i32, %arg1: i32) -> (i32, i32, i32) {
    %c0_i32 = arith.constant 0 : i32
    %c0_i32_0 = arith.constant 0 : i32
    %c0_i32_1 = arith.constant 0 : i32
    %c0_i32_2 = arith.constant 0 : i32
    return %c0_i32, %c0_i32_0, %c0_i32_1 : i32, i32, i32
  }
  func.func @transform_7(%arg0: i32, %arg1: i32) -> (i32, i32, i32) {
    %c0_i32 = arith.constant 0 : i32
    %c0_i32_0 = arith.constant 0 : i32
    %c0_i32_1 = arith.constant 0 : i32
    %c0_i32_2 = arith.constant 0 : i32
    return %c0_i32, %c0_i32_0, %c0_i32_1 : i32, i32, i32
  }
  func.func @transform_8(%arg0: i32, %arg1: i32) -> (i32, i32, i32) {
    %c0_i32 = arith.constant 0 : i32
    %c0_i32_0 = arith.constant 0 : i32
    %c0_i32_1 = arith.constant 0 : i32
    %c0_i32_2 = arith.constant 0 : i32
    return %c0_i32, %c0_i32_0, %c0_i32_1 : i32, i32, i32
  }
  func.func @transform_9(%arg0: i32, %arg1: i32) -> (i32, i32, i32) {
    %c0_i32 = arith.constant 0 : i32
    %c0_i32_0 = arith.constant 0 : i32
    return %arg0, %arg1, %c0_i32 : i32, i32, i32
  }
}

</mosaic_0001>

<bundles_post_ra>
// kernel: div.5
= control target key start
LH: loop header
LB: loop body
LE: loop exit
PB: predicated region body
PF: predicated region fallthrough
CT: control target
= control target key end

     0   :  { %s346_s0 = inlined_call_operand.vmem [shape: f32[2,20,1], index: 0, kind: input, shape index: {}]   ;;  %s347_s1 = inlined_call_operand.vmem [shape: f32[2,20,1], index: 1, kind: input, shape index: {}]   ;;  %s348_s2 = inlined_call_operand.vmem [shape: f32[2,20,1], index: 2, kind: output, shape index: {}]  }
   0x1   :  { %v4_v0 = vld [vmem:[%s347_s1] sm:$0xff]  ;;  %v145_v1 = vld [vmem:[%s347_s1 + $0x18] sm:$0xff]  ;;  %v195_v2 = vld [vmem:[%s347_s1 + $0x8] sm:$0xff] }
   0x2   :  { %159 = vrcp.f32 %v4_v0  ;;  %v16_v3 = vand.u32 2147483647, %v4_v0  ;;  %v18_v4 = vand.u32 2147483648, %v4_v0  ;;  %v200_v5 = vld [vmem:[%s347_s1 + $0x20] sm:$0xff]  ;;  %v39_v6 = vand.u32 2147483647, %v145_v1 }
   0x3   :  { %161 = vrcp.f32 %v145_v1  ;;  %v41_v7 = vand.u32 2147483648, %v145_v1  ;;  %v206_v8 = vld [vmem:[%s347_s1 + $0x10] sm:$0xff]  ;;  %vm12_vm0 = vweird.f32 %v4_v0  ;;  %v63_v9 = vand.u32 2147483647, %v195_v2  ;;  %v215_v12 = vld [vmem:[%s347_s1 + $0x28] sm:$0xff]  ;;  %v3_v49 = vld [vmem:[%s346_s0] sm:$0xff] }
   0x4   :  { %163 = vrcp.f32 %v195_v2  ;;  %vm35_vm1 = vweird.f32 %v145_v1  ;;  %v65_v10 = vand.u32 2147483648, %v195_v2  ;;  %v89_v11 = vand.u32 2147483648, %v200_v5  ;;  %v144_v55 = vld [vmem:[%s346_s0 + $0x18] sm:$0xff]  ;;  %v147_v60 = vld [vmem:[%s346_s0 + $0x8] sm:$0xff]  ;;  %v153_v13 = vld [vmem:[%s346_s0 + $0x10] sm:$0xff] }
   0x5   :  { %165 = vrcp.f32 %v200_v5  ;;  %vm217_vm2 = vcmp.eq.f32.partialorder %v16_v3, 8.507059e+37  ;;  %v19_v14 = vor.u32 1.1754944e-38, %v18_v4  ;;  %vm59_vm3 = vweird.f32 %v195_v2 }
   0x6   :  { %v87_v15 = vand.u32 2147483647, %v200_v5  ;;  %167 = vrcp.f32 %v206_v8  ;;  %vm224_vm4 = vcmp.eq.f32.partialorder %v39_v6, 8.507059e+37  ;;  %v42_v18 = vor.u32 1.1754944e-38, %v41_v7  ;;  %v150_v7 = vld [vmem:[%s346_s0 + $0x20] sm:$0xff] }
   0x7   :  { %v111_v19 = vand.u32 2147483647, %v206_v8  ;;  %v113_v20 = vand.u32 2147483648, %v206_v8  ;;  %vm230_vm5 = vcmp.eq.f32.partialorder %v63_v9, 8.507059e+37  ;;  %vm83_vm6 = vweird.f32 %v200_v5 }
   0x8   :  { %v160_v16 = vpop.eup %159  ;;  %169 = vrcp.f32 %v215_v12  ;;  %v66_v26 = vor.u32 1.1754944e-38, %v65_v10  ;;  %v236_v27 = vor.u32 1.1754944e-38, %v89_v11  ;;  %vm107_vm7 = vweird.f32 %v206_v8 }
   0x9   :  { %v162_v21 = vpop.eup %161  ;;  %v8_v22 = vmul.f32 %v160_v16, %v4_v0  ;;  %vm13_vm8 = vweird.f32 %v160_v16  ;;  %vm240_vm9 = vcmp.eq.f32.partialorder %v87_v15, 8.507059e+37  ;;  %vm131_vm10 = vweird.f32 %v215_v12 }
   0xa   :  { %v164_v24 = vpop.eup %163  ;;  %v31_v25 = vmul.f32 %v162_v21, %v145_v1  ;;  %vm36_vm11 = vweird.f32 %v162_v21  ;;  %vm245_vm12 = vcmp.eq.f32.partialorder %v111_v19, 8.507059e+37  ;;  %v114_v34 = vor.u32 1.1754944e-38, %v113_v20  ;;  %vm251_vm14 = vmor %vm12_vm0, %vm13_vm8  ;;  %v156_v19 = vld [vmem:[%s346_s0 + $0x28] sm:$0xff] }
   0xb   :  { %v9_v28 = vsub.f32 1.0, %v8_v22  ;;  %v55_v29 = vmul.f32 %v164_v24, %v195_v2  ;;  %v166_v31 = vpop.eup %165  ;;  %vm60_vm13 = vweird.f32 %v164_v24  ;;  %v135_v42 = vand.u32 2147483647, %v215_v12  ;;  %vm260_vm15 = vmor %vm35_vm1, %vm36_vm11 }
   0xc   :  { %v32_v32 = vsub.f32 1.0, %v31_v25  ;;  %v168_v35 = vpop.eup %167  ;;  %v79_v38 = vmul.f32 %v166_v31, %v200_v5  ;;  %v137_v43 = vand.u32 2147483648, %v215_v12  ;;  %vm84_vm0 = vweird.f32 %v166_v31  ;;  %vm270_vm1 = vmor %vm59_vm3, %vm60_vm13 }
   0xd   :  { %v10_v36 = vmul.f32 %v160_v16, %v9_v28  ;;  %v56_v37 = vsub.f32 1.0, %v55_v29  ;;  %v103_v41 = vmul.f32 %v168_v35, %v206_v8  ;;  %vm108_vm3 = vweird.f32 %v168_v35 }
   0xe   :  { %v33_v40 = vmul.f32 %v162_v21, %v32_v32  ;;  %v170_v44 = vpop.eup %169  ;;  %v80_v48 = vsub.f32 1.0, %v79_v38 }
   0xf   :  { %v11_v45 = vadd.f32 %v160_v16, %v10_v36  ;;  %v57_v47 = vmul.f32 %v164_v24, %v56_v37  ;;  %v104_v52 = vsub.f32 1.0, %v103_v41  ;;  %v127_v53 = vmul.f32 %v170_v44, %v215_v12 }
  0x10   :  { %v34_v50 = vadd.f32 %v162_v21, %v33_v40  ;;  %v81_v57 = vmul.f32 %v166_v31, %v80_v48  ;;  %vm132_vm8 = vweird.f32 %v170_v44  ;;  %v138_v12 = vor.u32 1.1754944e-38, %v137_v43 }
  0x11   :  { %v15_v54 = vsel %vm251_vm14, %v160_v16, %v11_v45  ;;  %v58_v56 = vadd.f32 %v164_v24, %v57_v47  ;;  %v105_v62 = vmul.f32 %v168_v35, %v104_v52  ;;  %v128_v63 = vsub.f32 1.0, %v127_v53 }
  0x12   :  { %v20_v58 = vsel %vm217_vm2, %v19_v14, %v15_v54  ;;  %v38_v59 = vsel %vm260_vm15, %v162_v21, %v34_v50  ;;  %vm290_vm2 = vmor %vm83_vm6, %vm84_vm0  ;;  %v82_v3 = vadd.f32 %v166_v31, %v81_v57  ;;  %vm136_vm6 = vcmp.eq.f32.partialorder %v135_v42, 8.507059e+37 }
  0x13   :  { %v21_v0 = vmul.f32 %v20_v58, %v3_v49  ;;  %v43_v1 = vsel %vm224_vm4, %v42_v18, %v38_v59  ;;  %v62_v2 = vsel %vm270_vm1, %v164_v24, %v58_v56  ;;  %vm301_vm4 = vmor %vm107_vm7, %vm108_vm3  ;;  %v106_v8 = vadd.f32 %v168_v35, %v105_v62 }
  0x14   :  { %v44_v5 = vmul.f32 %v144_v55, %v43_v1  ;;  %v67_v6 = vsel %vm230_vm5, %v66_v26, %v62_v2  ;;  %v129_v9 = vmul.f32 %v170_v44, %v128_v63  ;;  %v86_v11 = vsel %vm290_vm2, %v166_v31, %v82_v3  ;;  %vm133_vm5 = vmor %vm131_vm10, %vm132_vm8 }
  0x15   :  { %23 = vst [vmem:[%s348_s2] sm:$0xff] %v21_v0  ;;  %v68_v10 = vmul.f32 %v147_v60, %v67_v6  ;;  %v91_v14 = vsel %vm240_vm9, %v236_v27, %v86_v11  ;;  %v110_v15 = vsel %vm301_vm4, %v168_v35, %v106_v8 }
  0x16   :  { %146 = vst [vmem:[%s348_s2 + $0x18] sm:$0xff] %v44_v5  ;;  %v130_v16 = vadd.f32 %v170_v44, %v129_v9  ;;  %v92_v17 = vmul.f32 %v150_v7, %v91_v14  ;;  %v115_v18 = vsel %vm245_vm12, %v114_v34, %v110_v15 }
  0x17   :  { %149 = vst [vmem:[%s348_s2 + $0x8] sm:$0xff] %v68_v10  ;;  %v116_v20 = vmul.f32 %v153_v13, %v115_v18 }
  0x18   :  { %v134_v21 = vsel %vm133_vm5, %v170_v44, %v130_v16  ;;  %152 = vst [vmem:[%s348_s2 + $0x20] sm:$0xff] %v92_v17 }
  0x19   :  { %v139_v22 = vsel %vm136_vm6, %v138_v12, %v134_v21  ;;  %155 = vst [vmem:[%s348_s2 + $0x10] sm:$0xff] %v116_v20 }
  0x1a   :  { %v140_v23 = vmul.f32 %v156_v19, %v139_v22 }
  0x1c   :  { %158 = vst [vmem:[%s348_s2 + $0x28] sm:$0xff] %v140_v23 }

// kernel: gated_dss_decoder_layer.1
= control target key start
LH: loop header
LB: loop body
LE: loop exit
PB: predicated region body
PF: predicated region fallthrough
CT: control target
= control target key end

     0   :  { %s1544_s30 = smov 0   ;;  %s1546_s10 = smov 0   ;;  %s1782_s0 = inlined_call_operand.vmem [shape: f32[2,24,128], index: 0, kind: input, shape index: {}]   ;;  %s1783_s1 = inlined_call_operand.vmem [shape: f32[2,24,1], index: 1, kind: input, shape index: {}]   ;;  %s1784_s2 = inlined_call_operand.vmem [shape: f32[2,2,128], index: 2, kind: input, shape index: {}]   ;;  %s1785_s3 = inlined_call_operand.vmem [shape: bf16[8,8], index: 3, kind: input, shape index: {}]   ;;  %s1786_s4 = inlined_call_operand.vmem [shape: bf16[3,128,128], index: 4, kind: input, shape index: {}]   ;;  %s1787_s5 = inlined_call_operand.vmem [shape: bf16[256,128], index: 5, kind: input, shape index: {}]   ;;  %s1788_s6 = inlined_call_operand.vmem [shape: f32[4,1,128], index: 6, kind: input, shape index: {}]   ;;  %s1789_s7 = inlined_call_operand.vmem [shape: f32[2,1,128], index: 7, kind: input, shape index: {}]   ;;  %s1790_s8 = inlined_call_operand.vmem [shape: f32[2,1,128], index: 8, kind: input, shape index: {}]   ;;  %s1791_s9 = inlined_call_operand.vmem [shape: f32[2,24,128], index: 9, kind: output, shape index: {}]  }
   0x1   :  { %s1548_s11 = smov 0   ;;  %s1550_s12 = smov 0  }
   0x2   :  { %s1552_s13 = smov 0  }
   0x3 LB: > { %s28_s14 = sadd.s32 1, %s1481_s11  ;;  %s31_s15 = sadd.s32 1, %s1485_s12  ;;  %s1489_s13 = sphi %s1552_s13, %s19_s13   ;;  %s1485_s12 = sphi %s1550_s12, %s1797_s12   ;;  %s1481_s11 = sphi %s1548_s11, %s1796_s11   ;;  %s1477_s10 = sphi %s1546_s10, %s1795_s10   ;;  %s1473_s30 = sphi %s1544_s30, %s1794_s30  }
   0x4   : > { %p29_p0 = scmp.ge.s32.totalorder %s28_s14, 3  ;;  %p1129_p1 = scmp.ge.s32.totalorder %s1489_s13, 1 }
   0x5   : > { %p330_p2 = scmp.lt.s32.totalorder %s1489_s13, 7 }
   0x6   : > { %s1799_s14 = smov (%p29_p0, %s28_s14), 0  ;;  %s1801_s15 = smov (!%p29_p0, %s31_s15), %s1485_s12 }
   0x7   : > { %p331_p3 = pnand %p1129_p1, %p330_p2  ;;  %p33_p4 = scmp.ge.s32.totalorder %s1801_s15, 2 }
   0x8   : > { %p384_p5 = scmp.lt.s32.totalorder (!%p331_p3), %s1477_s10, 1  ;;  %p386_p6 = scmp.lt.s32.totalorder (!%p331_p3), %s1473_s30, 2 }
   0x9   : > { %s1803_s15 = smov (%p33_p4, %s1801_s15), 0  ;;  %334 = sbr.rel (%p331_p3) target bundleno = 1314 (0x522), region = 56 }
   0xa   : > { %1792 = sst [smem:[#allocation4_spill]] %s1803_s15  ;;  %p1134_p7 = scmp.ne.s32.totalorder (!%p331_p3), %s1473_s30, 0 }
   0xe   : > { %s1805_s10 = smov (!%p384_p5, %s1477_s10), 1 }
   0xf   : > { %s387_s16 = scalar_select %p386_p6, %s1473_s30, 2 }
  0x10   : > { %s1383_s17 = smul.u32 3, %s1805_s10  ;;  %s1132_s18 = sshll.u32 %s1805_s10, 1 }
  0x11   : > { %s403_s21 = scalar_lea.vmem %s1784_s2, %s1132_s18 }
  0x12   : > { %s389_s22 = sadd.s32 %s1383_s17, %s387_s16  ;;  %v1581_v0 = vld [vmem:[%s403_s21] sm:$0x3]  ;;  %419 = sbr.rel (%p1134_p7) target bundleno = 25 (0x19), region = 60 }
  0x13   : > { %s1583_s23 = sshll.u32 %s389_s22, 3 }
  0x14   : > { %s391_s26 = scalar_lea.vmem %s1782_s0, %s1583_s23  ;;  %s399_s29 = scalar_lea.vmem %s1783_s1, %s1583_s23 }
  0x15   : > { %s411_s18 = scalar_lea.vmem %s1791_s9, %s1583_s23  ;;  %v413_v1 = vld [vmem:[%s391_s26] sm:$0xff] }
  0x16   : > { %v414_v2 = vld [vmem:[%s399_s29] sm:$0xff] }
  0x17   : > { %v1491_v3 = vmov 0.0  }
  0x18   : > { %420 = vst [vmem:[#allocation2] sm:$0x1] %v1491_v3 }
  0x19 PF: > { %v422_v4 = vpack.c.bf16 %v413_v1, %v413_v1  ;;  %vm431_vm0 = vcmask 1043456   ;;  %v421_v6 = vld [vmem:[%s1785_s3] sm:$0xf]  ;;  %vm427_vm1 = vcmask 64512   ;;  %s448_s15 = sadd.s32 1, %s1473_s30 }
  0x1a   : > { %p1136_p8 = scmp.ge.s32.totalorder %s448_s15, 3 }
  0x1b   : > { %v433_v5 = vsel %vm431_vm0, %v422_v4, 0 }
  0x1c   : > { %442 = vmatpush.bf16.msra.mxu0 %v433_v5 }
  0x1f   : > { %1135 = vmatmul.msk.bf16.vlgmr.msra.gmra.mxu0 %vm427_vm1, %v421_v6  ;;  %v1427_v7 = vld [vmem:[#allocation2] ss:$0 sm:$0xff] }
  0x9c   : > { %v444_v8 = vpop.f32.mrf.mxu0 }
  0x9d   : > { %v1602_v9 = vadd.f32 %v1427_v7, %v444_v8 }
  0xa0   : > { %452 = sbr.rel (%p1136_p8) target bundleno = 180 (0xb4), region = 64 }
  0xa4   : > { %v446_v10 = vpop.f32.mrf.mxu0 }
  0xa5   : > { %v454_v11 = vrot.slane %v413_v1, 4  ;;  %v453_v16 = vld [vmem:[#allocation2] sm:$0x1] }
  0xa7   : > { %v455_v12 = vadd.f32 %v454_v11, %v413_v1 }
  0xa9   : > { %v456_v13 = vrot.slane %v455_v12, 2 }
  0xab   : > { %v457_v14 = vadd.f32 %v456_v13, %v455_v12 }
  0xad   : > { %v458_v15 = vrot.slane %v457_v14, 1 }
  0xaf   : > { %v459_v17 = vadd.f32 %v458_v15, %v457_v14 }
  0xb1   : > { %v460_v18 = vadd.f32 %v459_v17, %v453_v16 }
  0xb3   : > { %461 = vst [vmem:[#allocation2] sm:$0x1] %v460_v18 }
  0xb4 PF: > { %v1345_v19 = vld [vmem:[%s1786_s4 + $0x38] sm:$0xff]  ;;  %v1492_v21 = vmov 0   ;;  %v1344_v22 = vld [vmem:[%s1786_s4 + $0x30] sm:$0xff]  ;;  %v1343_v24 = vld [vmem:[%s1786_s4 + $0x28] sm:$0xff] }
  0xb5   : > { %v1353_v20 = vld [vmem:[%s1786_s4 + $0x78] sm:$0xff]  ;;  %1428 = vset.pattern.permute.xlu0 %v1492_v21  ;;  %530 = vmatpush.bf16.msra.mxu1 %v1345_v19  ;;  %v1352_v23 = vld [vmem:[%s1786_s4 + $0x70] sm:$0xff]  ;;  %v1351_v25 = vld [vmem:[%s1786_s4 + $0x68] sm:$0xff] }
  0xb6   : > { %545 = vperm.xlu0 %1428, %v414_v2   ;;  %620 = vmatpush.bf16.msra.mxu2 %v1353_v20  ;;  %v1342_v26 = vld [vmem:[%s1786_s4 + $0x20] sm:$0xff]  ;;  %v1341_v28 = vld [vmem:[%s1786_s4 + $0x18] sm:$0xff]  ;;  %v1340_v30 = vld [vmem:[%s1786_s4 + $0x10] sm:$0xff] }
  0xb7   : > { %v1350_v27 = vld [vmem:[%s1786_s4 + $0x60] sm:$0xff]  ;;  %v1349_v29 = vld [vmem:[%s1786_s4 + $0x58] sm:$0xff]  ;;  %v1348_v31 = vld [vmem:[%s1786_s4 + $0x50] sm:$0xff] }
  0xb8   : > { %v1339_v32 = vld [vmem:[%s1786_s4 + $0x8] sm:$0xff]  ;;  %v1338_v34 = vld [vmem:[%s1786_s4] sm:$0xff]  ;;  %v1361_v36 = vld [vmem:[%s1787_s5 + $0x38] sm:$0xff] }
  0xb9   : > { %531 = vmatpush.bf16.msra.mxu1 %v1344_v22  ;;  %v1347_v33 = vld [vmem:[%s1786_s4 + $0x48] sm:$0xff]  ;;  %v1346_v35 = vld [vmem:[%s1786_s4 + $0x40] sm:$0xff]  ;;  %v1369_v37 = vld [vmem:[%s1787_s5 + $0x78] sm:$0xff]  ;;  %778 = vmatpush.bf16.msra.mxu3 %v1361_v36 }
  0xba   : > { %621 = vmatpush.bf16.msra.mxu2 %v1352_v23  ;;  %791 = vmatpush.bf16.msrb.mxu0 %v1369_v37  ;;  %v1360_v38 = vld [vmem:[%s1787_s5 + $0x30] sm:$0xff]  ;;  %v1359_v40 = vld [vmem:[%s1787_s5 + $0x28] sm:$0xff]  ;;  %v1358_v42 = vld [vmem:[%s1787_s5 + $0x20] sm:$0xff] }
  0xbb   : > { %v1368_v39 = vld [vmem:[%s1787_s5 + $0x70] sm:$0xff]  ;;  %v1367_v41 = vld [vmem:[%s1787_s5 + $0x68] sm:$0xff]  ;;  %v1366_v43 = vld [vmem:[%s1787_s5 + $0x60] sm:$0xff] }
  0xbc   : > { %v1357_v47 = vld [vmem:[%s1787_s5 + $0x18] sm:$0xff]  ;;  %v1356_v49 = vld [vmem:[%s1787_s5 + $0x10] sm:$0xff]  ;;  %v1355_v53 = vld [vmem:[%s1787_s5 + $0x8] sm:$0xff] }
  0xbd   : > { %532 = vmatpush.bf16.msra.mxu1 %v1343_v24  ;;  %779 = vmatpush.bf16.msra.mxu3 %v1360_v38  ;;  %v1365_v48 = vld [vmem:[%s1787_s5 + $0x58] sm:$0xff]  ;;  %v1364_v50 = vld [vmem:[%s1787_s5 + $0x50] sm:$0xff]  ;;  %v1363_v54 = vld [vmem:[%s1787_s5 + $0x48] sm:$0xff] }
  0xbe   : > { %622 = vmatpush.bf16.msra.mxu2 %v1351_v25  ;;  %792 = vmatpush.bf16.msrb.mxu0 %v1368_v39  ;;  %v1354_v55 = vld [vmem:[%s1787_s5] sm:$0xff] }
  0xbf   : > { %v1362_v56 = vld [vmem:[%s1787_s5 + $0x40] sm:$0xff] }
  0xc0   : > { %v1429_v57 = vld [vmem:[%s1788_s6] ss:$0 sm:$0xff]  ;;  %v1430_v58 = vld [vmem:[%s1788_s6 + $0x1] ss:$0 sm:$0xff]  ;;  %v1431_v6 = vld [vmem:[%s1788_s6 + $0x2] ss:$0 sm:$0xff] }
  0xc1   : > { %533 = vmatpush.bf16.msra.mxu1 %v1342_v26  ;;  %780 = vmatpush.bf16.msra.mxu3 %v1359_v40 }
  0xc2   : > { %623 = vmatpush.bf16.msra.mxu2 %v1350_v27  ;;  %793 = vmatpush.bf16.msrb.mxu0 %v1367_v41 }
  0xc5   : > { %534 = vmatpush.bf16.msra.mxu1 %v1341_v28  ;;  %781 = vmatpush.bf16.msra.mxu3 %v1358_v42  ;;  %v1376_v42 = vld [vmem:[%s1786_s4 + $0xb0] sm:$0xff] }
  0xc6   : > { %624 = vmatpush.bf16.msra.mxu2 %v1349_v29  ;;  %794 = vmatpush.bf16.msrb.mxu0 %v1366_v43  ;;  %v1375_v43 = vld [vmem:[%s1786_s4 + $0xa8] sm:$0xff] }
  0xc9   : > { %535 = vmatpush.bf16.msra.mxu1 %v1340_v30  ;;  %782 = vmatpush.bf16.msra.mxu3 %v1357_v47  ;;  %v1493_v30 = vmov 128.0   ;;  %v1371_v47 = vld [vmem:[%s1786_s4 + $0x88] sm:$0xff] }
  0xca   : > { %625 = vmatpush.bf16.msra.mxu2 %v1348_v31  ;;  %795 = vmatpush.bf16.msrb.mxu0 %v1365_v48  ;;  %v1377_v31 = vld [vmem:[%s1786_s4 + $0xb8] sm:$0xff]  ;;  %v1370_v48 = vld [vmem:[%s1786_s4 + $0x80] sm:$0xff] }
  0xcd   : > { %536 = vmatpush.bf16.msra.mxu1 %v1339_v32  ;;  %783 = vmatpush.bf16.msra.mxu3 %v1356_v49 }
  0xce   : > { %626 = vmatpush.bf16.msra.mxu2 %v1347_v33  ;;  %796 = vmatpush.bf16.msrb.mxu0 %v1364_v50 }
  0xd1   : > { %537 = vmatpush.bf16.msra.mxu1 %v1338_v34  ;;  %784 = vmatpush.bf16.msra.mxu3 %v1355_v53 }
  0xd2   : > { %627 = vmatpush.bf16.msra.mxu2 %v1346_v35  ;;  %797 = vmatpush.bf16.msrb.mxu0 %v1363_v54 }
  0xd4   : > { %538 = vmatmul.bf16.vlgmr.msra.gmra.mxu1 %v422_v4 }
  0xd5   : > { %785 = vmatpush.bf16.msra.mxu3 %v1354_v55  ;;  %936 = vmatpush.bf16.msrb.mxu1 %v1377_v31 }
  0xd6   : > { %798 = vmatpush.bf16.msrb.mxu0 %v1362_v56 }
  0xd9   : > { %937 = vmatpush.bf16.msrb.mxu1 %v1376_v42 }
  0xdd   : > { %938 = vmatpush.bf16.msrb.mxu1 %v1375_v43 }
 0x128   : > { %v546_v44 = vpop.permute.xlu0 %545 }
 0x129   : > { %v548_v45 = vmul.f32 %v546_v44, %v1602_v9  ;;  %v1374_v44 = vld [vmem:[%s1786_s4 + $0xa0] sm:$0xff] }
 0x12a   : > { %939 = vmatpush.bf16.msrb.mxu1 %v1374_v44 }
 0x12b   : > { %v549_v46 = vpack.c.bf16 %v548_v45, %v548_v45  ;;  %v1373_v45 = vld [vmem:[%s1786_s4 + $0x98] sm:$0xff] }
 0x12d   : > { %628 = vmatmul.bf16.vlgmr.msra.gmra.mxu2 %v549_v46  ;;  %v1372_v46 = vld [vmem:[%s1786_s4 + $0x90] sm:$0xff] }
 0x12e   : > { %940 = vmatpush.bf16.msrb.mxu1 %v1373_v45 }
 0x132   : > { %941 = vmatpush.bf16.msrb.mxu1 %v1372_v46 }
 0x136   : > { %942 = vmatpush.bf16.msrb.mxu1 %v1371_v47 }
 0x13a   : > { %943 = vmatpush.bf16.msrb.mxu1 %v1370_v48 }
 0x151   : > { %v539_v51 = vpop.f32.mrf.mxu1 }
 0x152   : > { %v1707_v59 = vadd.f32 %v1429_v57, %v539_v51 }
 0x159   : > { %v541_v52 = vpop.f32.mrf.mxu1 }
 0x1b0   : > { %v629_v60 = vpop.f32.mrf.mxu2 }
 0x1b1   : > { %v630_v61 = vadd.f32 %v1430_v58, %v629_v60  ;;  %v1432_v58 = vld [vmem:[%s1789_s7] ss:$0 sm:$0xff] }
 0x1b3   : > { %v1381_v62 = vpack.c.bf16 %v630_v61, %v1707_v59  ;;  %v823_v23 = vsub.f32 %v1707_v59, %v630_v61 }
 0x1b5   : > { %v676_v63 = vunpack.c.l.b16 %v1381_v62  ;;  %v677_v1 = vunpack.c.h.b16 %v1381_v62  ;;  %v1433_v62 = vld [vmem:[%s1790_s8] ss:$0 sm:$0xff] }
 0x1b7   : > { %v678_v2 = vpack.c.b16 %v676_v63, %v676_v63  ;;  %v679_v3 = vpack.c.b16 %v677_v1, %v677_v1 }
 0x1b8   : > { %v631_v4 = vpop.f32.mrf.mxu2 }
 0x1b9   : > { %786 = vmatmul.bf16.vlgmr.msra.gmra.mxu3 %v678_v2  ;;  %799 = vmatmul.bf16.vlgmr.msrb.gmra.mxu0 %v679_v3  ;;  %v1434_v3 = vld [vmem:[%s1788_s6 + $0x3] ss:$0 sm:$0xff]  ;;  %v949_v4 = vperm.slane %v1581_v0, 1 }
 0x236   : > { %v800_v5 = vpop.f32.mrf.mxu0 }
 0x23c   : > { %v787_v7 = vpop.f32.mrf.mxu3 }
 0x23d   : > { %v788_v8 = vadd.f32 %v1431_v6, %v787_v7 }
 0x23e   : > { %v802_v9 = vpop.f32.mrf.mxu0 }
 0x23f   : > { %v801_v10 = vadd.f32 %v800_v5, %v788_v8 }
 0x241   : > { %v1283_v11 = vmul.f32 -1.442695, %v801_v10 }
 0x243   : > { %1437 = vpow2.f32 %v1283_v11 }
 0x244   : > { %v789_v12 = vpop.f32.mrf.mxu3 }
 0x249   : > { %v1438_v13 = vpop.eup %1437 }
 0x24a   : > { %v807_v14 = vadd.f32 1.0, %v1438_v13 }
 0x24c   : > { %1439 = vrcp.f32 %v807_v14  ;;  %v819_v18 = vand.u32 2147483648, %v807_v14  ;;  %v817_v20 = vand.u32 2147483647, %v807_v14  ;;  %vm813_vm3 = vweird.f32 %v807_v14 }
 0x24d   : > { %1441 = vrcp.f32 %v1493_v30 }
 0x24e   : > { %v820_v22 = vor.u32 1.1754944e-38, %v819_v18  ;;  %vm818_vm5 = vcmp.eq.f32.partialorder %v817_v20, 8.507059e+37 }
 0x252   : > { %v1440_v15 = vpop.eup %1439 }
 0x253   : > { %v809_v16 = vmul.f32 %v1440_v15, %v807_v14  ;;  %vm814_vm2 = vweird.f32 %v1440_v15  ;;  %v1442_v32 = vpop.eup %1441 }
 0x254   : > { %vm815_vm4 = vmor %vm813_vm3, %vm814_vm2  ;;  %v831_v33 = vmul.f32 128.0, %v1442_v32  ;;  %vm835_vm6 = vweird.f32 %v1442_v32 }
 0x255   : > { %v810_v17 = vsub.f32 1.0, %v809_v16  ;;  %v970_v16 = vperm.slane %v1581_v0, 0 }
 0x256   : > { %v832_v34 = vsub.f32 1.0, %v831_v33 }
 0x257   : > { %v811_v19 = vmul.f32 %v1440_v15, %v810_v17 }
 0x258   : > { %v833_v35 = vmul.f32 %v1442_v32, %v832_v34 }
 0x259   : > { %v812_v21 = vadd.f32 %v1440_v15, %v811_v19 }
 0x25a   : > { %v834_v36 = vadd.f32 %v1442_v32, %v833_v35 }
 0x25b   : > { %v816_v24 = vsel %vm815_vm4, %v1440_v15, %v812_v21  ;;  %v971_v21 = vsub.f32 %v1707_v59, %v970_v16 }
 0x25c   : > { %v821_v25 = vsel %vm818_vm5, %v820_v22, %v816_v24  ;;  %v1717_v37 = vsel %vm835_vm6, %v1442_v32, %v834_v36 }
 0x25d   : > { %v824_v26 = vmul.f32 %v823_v23, %v821_v25 }
 0x25f   : > { %v825_v27 = vadd.f32 %v824_v26, %v630_v61 }
 0x261   : > { %v826_v28 = vmax.f32 %v825_v27, 0.0 }
 0x263   : > { %v827_v29 = vadd.f32 %v826_v28, %v825_v27 }
 0x265   : > { %828 = vadd.xlane.f32.xlu0 %v827_v29 }
 0x2d8   : > { %v829_v38 = vpop.xlane.xlu0 %828 }
 0x2d9   : > { %v837_v39 = vmul.f32 %v1717_v37, %v829_v38 }
 0x2db   : > { %v838_v40 = vsub.f32 %v827_v29, %v837_v39 }
 0x2dd   : > { %v839_v41 = vmul.f32 %v838_v40, %v838_v40 }
 0x2df   : > { %840 = vadd.xlane.f32.xlu1 %v839_v41 }
 0x352   : > { %v841_v49 = vpop.xlane.xlu1 %840 }
 0x353   : > { %v842_v50 = vmul.f32 %v841_v49, %v1717_v37 }
 0x355   : > { %v843_v51 = vadd.f32 1e-05, %v842_v50 }
 0x357   : > { %1443 = vrsqrt.f32 %v843_v51  ;;  %vm850_vm8 = vweird.f32 %v843_v51 }
 0x35d   : > { %v1444_v52 = vpop.eup %1443 }
 0x35e   : > { %v845_v53 = vmul.f32 %v1444_v52, %v843_v51  ;;  %vm851_vm7 = vweird.f32 %v1444_v52 }
 0x35f   : > { %vm852_vm9 = vmor %vm850_vm8, %vm851_vm7 }
 0x360   : > { %v846_v54 = vmul.f32 %v1444_v52, %v845_v53 }
 0x362   : > { %v847_v55 = vmul.f32 0.5, %v846_v54 }
 0x364   : > { %v848_v56 = vsub.f32 1.5, %v847_v55 }
 0x366   : > { %v849_v57 = vmul.f32 %v1444_v52, %v848_v56 }
 0x368   : > { %v853_v60 = vsel %vm852_vm9, %v1444_v52, %v849_v57 }
 0x369   : > { %v854_v61 = vmul.f32 %v853_v60, %v838_v40  ;;  %v1435_v40 = vld [vmem:[%s1789_s7 + $0x1] ss:$0 sm:$0xff] }
 0x36b   : > { %v859_v63 = vmul.f32 %v1432_v58, %v854_v61 }
 0x36d   : > { %v864_v1 = vadd.f32 %v1433_v62, %v859_v63 }
 0x36f   : > { %v865_v2 = vpack.c.bf16 %v864_v1, %v864_v1 }
 0x371   : > { %944 = vmatmul.bf16.vlgmr.msrb.gmra.mxu1 %v865_v2 }
 0x3ee   : > { %v945_v5 = vpop.f32.mrf.mxu1 }
 0x3ef   : > { %v946_v6 = vadd.f32 %v1434_v3, %v945_v5 }
 0x3f1   : > { %v950_v7 = vadd.f32 %v949_v4, %v946_v6 }
 0x3f3   : > { %v1333_v8 = vmul.f32 -1.442695, %v950_v7 }
 0x3f5   : > { %1445 = vpow2.f32 %v1333_v8 }
 0x3f6   : > { %v947_v9 = vpop.f32.mrf.mxu1 }
 0x3fb   : > { %v1446_v10 = vpop.eup %1445 }
 0x3fc   : > { %v954_v11 = vadd.f32 1.0, %v1446_v10 }
 0x3fe   : > { %1447 = vrcp.f32 %v954_v11  ;;  %v966_v15 = vand.u32 2147483648, %v954_v11  ;;  %v964_v18 = vand.u32 2147483647, %v954_v11  ;;  %vm960_vm11 = vweird.f32 %v954_v11 }
 0x400   : > { %v967_v20 = vor.u32 1.1754944e-38, %v966_v15  ;;  %vm965_vm13 = vcmp.eq.f32.partialorder %v964_v18, 8.507059e+37 }
 0x404   : > { %v1448_v12 = vpop.eup %1447 }
 0x405   : > { %v956_v13 = vmul.f32 %v1448_v12, %v954_v11  ;;  %vm961_vm10 = vweird.f32 %v1448_v12 }
 0x406   : > { %vm962_vm12 = vmor %vm960_vm11, %vm961_vm10 }
 0x407   : > { %v957_v14 = vsub.f32 1.0, %v956_v13 }
 0x409   : > { %v958_v17 = vmul.f32 %v1448_v12, %v957_v14 }
 0x40b   : > { %v959_v19 = vadd.f32 %v1448_v12, %v958_v17 }
 0x40d   : > { %v963_v22 = vsel %vm962_vm12, %v1448_v12, %v959_v19 }
 0x40e   : > { %v968_v23 = vsel %vm965_vm13, %v967_v20, %v963_v22 }
 0x40f   : > { %v972_v24 = vmul.f32 %v971_v21, %v968_v23 }
 0x411   : > { %v973_v25 = vadd.f32 %v972_v24, %v970_v16 }
 0x413   : > { %v974_v26 = vmax.f32 %v973_v25, 0.0 }
 0x415   : > { %v975_v27 = vadd.f32 %v974_v26, %v973_v25 }
 0x417   : > { %976 = vadd.xlane.f32.xlu1 %v975_v27 }
 0x48a   : > { %v977_v28 = vpop.xlane.xlu1 %976 }
 0x48b   : > { %v978_v0 = vmul.f32 %v977_v28, %v1717_v37 }
 0x48d   : > { %v979_v29 = vsub.f32 %v975_v27, %v978_v0 }
 0x48f   : > { %v980_v30 = vmul.f32 %v979_v29, %v979_v29 }
 0x491   : > { %981 = vadd.xlane.f32.xlu2 %v980_v30 }
 0x504   : > { %v982_v31 = vpop.xlane.xlu2 %981 }
 0x505   : > { %v983_v32 = vmul.f32 %v982_v31, %v1717_v37  ;;  %v1436_v37 = vld [vmem:[%s1790_s8 + $0x1] ss:$0 sm:$0xff] }
 0x507   : > { %v984_v33 = vadd.f32 1e-05, %v983_v32 }
 0x509   : > { %1449 = vrsqrt.f32 %v984_v33  ;;  %vm991_vm15 = vweird.f32 %v984_v33 }
 0x50f   : > { %v1450_v59 = vpop.eup %1449 }
 0x510   : > { %v986_v34 = vmul.f32 %v1450_v59, %v984_v33  ;;  %vm992_vm14 = vweird.f32 %v1450_v59 }
 0x511   : > { %vm993_vm0 = vmor %vm991_vm15, %vm992_vm14 }
 0x512   : > { %v987_v35 = vmul.f32 %v1450_v59, %v986_v34 }
 0x514   : > { %v988_v36 = vmul.f32 0.5, %v987_v35 }
 0x516   : > { %v989_v38 = vsub.f32 1.5, %v988_v36 }
 0x518   : > { %v990_v39 = vmul.f32 %v1450_v59, %v989_v38 }
 0x51a   : > { %v994_v41 = vsel %vm993_vm0, %v1450_v59, %v990_v39 }
 0x51b   : > { %v995_v42 = vmul.f32 %v994_v41, %v979_v29 }
 0x51d   : > { %v1001_v43 = vmul.f32 %v1435_v40, %v995_v42 }
 0x51f   : > { %v1007_v44 = vadd.f32 %v1436_v37, %v1001_v43 }
 0x521   : > { %1008 = vst [vmem:[%s411_s18] sm:$0xff] %v1007_v44 }
 0x522 PF: > { %s19_s13 = sadd.s32 1, %s1489_s13   ;;  %s1793_s27 = sld [smem:[#allocation4_spill]] }
 0x523   : > { %p16_p9 = scmp.ge.s32.totalorder %s19_s13, 8   ;;  %s1794_s30 = smov %s1481_s11 }
 0x524   : > { %s1795_s10 = smov %s1485_s12  ;;  %s1796_s11 = smov %s1799_s14 }
 0x525   :  { %18 = sbr.rel (!%p16_p9) target bundleno = 3 (0x3), region = 107 }
 0x528   : > { %s1797_s12 = smov %s1793_s27 }

</bundles_post_ra>
